<compile_context>
chip_gen: v6e
topology: v6e:2x2x1
jax: 0.10.0
libtpu: 0.0.40
codegen_flags: <defaults>
</compile_context>

<pallas_src>
import functools

import jax
import jax.numpy as jnp
from jax.experimental import pallas as pl
from jax.experimental.pallas import tpu as pltpu

_LANE = 128
_SUBLANE = 8


def _round_up(x, m):
    return ((x + m - 1) // m) * m


def _mlp_kernel(x_ref, w_ref, b_ref, out_ref, *, num_linear, compute_dtype):
    # x_ref:   (TILE_B, F)   compute_dtype   streamed batch tile
    # w_ref:   (L, F, F)     compute_dtype   zero-padded weight slab, VMEM-resident
    # b_ref:   (L, 1, F)     float32         zero-padded bias slab,  VMEM-resident
    # out_ref: (TILE_B, F)   float32         lane-dense store; real columns sliced in wrapper
    h = x_ref[...]
    for li in range(num_linear):  # static unroll (L is small: num_hidden_layer + 1)
        w = w_ref[li]             # (F, F)
        b = b_ref[li]             # (1, F)
        acc = jnp.dot(h, w, preferred_element_type=jnp.float32) + b
        if li < num_linear - 1:   # ReLU on all but the final layer
            acc = jnp.maximum(acc, 0.0)
            h = acc.astype(compute_dtype)
        else:
            h = acc
    out_ref[...] = h.astype(out_ref.dtype)


def pack_params(params, f_pad, compute_dtype):
    """Pack per-layer (W, b) into one zero-padded weight slab and one bias slab."""
    num_linear = len(params)
    w_slab = jnp.zeros((num_linear, f_pad, f_pad), dtype=compute_dtype)
    b_slab = jnp.zeros((num_linear, 1, f_pad), dtype=jnp.float32)
    for li, (w, b) in enumerate(params):
        fin, fout = w.shape
        w_slab = w_slab.at[li, :fin, :fout].set(w.astype(compute_dtype))
        b_slab = b_slab.at[li, 0, :fout].set(jnp.reshape(b, (-1,)).astype(jnp.float32))
    return w_slab, b_slab


def goal_conditioned_policy_net(x, params, *, compute_dtype=jnp.bfloat16, tile_b=None):
    """Fused MLP forward pass.

    Args:
      x: (B, input_size) float array.
      params: list of (W, b) with W shaped (in_features, out_features), b shaped (out_features,)
              or (1, out_features). float32 master copies.
      compute_dtype: matmul input dtype (bf16 recommended on v6e/v7x; f32 for strict accuracy).
      tile_b: batch tile (multiple of 8). Auto-chosen if None.
    Returns:
      (B, output_size) float32.
    """
    B, in_dim = x.shape
    dims = [in_dim] + [w.shape[1] for w, _ in params]
    out_dim = dims[-1]
    num_linear = len(params)

    f_pad = _round_up(max(dims), _LANE)                       # single padded feature width
    if tile_b is None:
        tile_b = min(512, _round_up(max(B, _SUBLANE), _SUBLANE))
    b_pad = _round_up(B, tile_b)
    grid = (b_pad // tile_b,)

    # Zero-padded, batch-padded input (zero rows/cols contribute exactly nothing to the matmuls).
    x_p = jnp.zeros((b_pad, f_pad), dtype=compute_dtype)
    x_p = x_p.at[:B, :in_dim].set(x.astype(compute_dtype))

    w_slab, b_slab = pack_params(params, f_pad, compute_dtype)

    kernel = functools.partial(
        _mlp_kernel, num_linear=num_linear, compute_dtype=compute_dtype)

    flops = 2 * b_pad * num_linear * f_pad * f_pad
    bytes_accessed = (
        x_p.size * x_p.dtype.itemsize
        + w_slab.size * w_slab.dtype.itemsize
        + b_slab.size * b_slab.dtype.itemsize
        + b_pad * f_pad * 4)

    out_p = pl.pallas_call(
        kernel,
        out_shape=jax.ShapeDtypeStruct((b_pad, f_pad), jnp.float32),
        grid=grid,
        in_specs=[
            pl.BlockSpec((tile_b, f_pad), lambda i: (i, 0)),                # streamed batch tiles
            pl.BlockSpec((num_linear, f_pad, f_pad), lambda i: (0, 0, 0)),  # resident weights
            pl.BlockSpec((num_linear, 1, f_pad), lambda i: (0, 0, 0)),      # resident biases
        ],
        out_specs=pl.BlockSpec((tile_b, f_pad), lambda i: (i, 0)),
        compiler_params=pltpu.CompilerParams(
            dimension_semantics=("parallel",)),
        cost_estimate=pl.CostEstimate(
            flops=flops, transcendentals=0, bytes_accessed=bytes_accessed),
    )(x_p, w_slab, b_slab)

    return out_p[:B, :out_dim]


def init_params(key, input_size, output_size, num_hidden_layer, hidden_dim):
    """Kaiming-normal (fan_in, relu) init, zero bias -- matches module.init_weight()."""
    dims = [input_size] + [hidden_dim] * num_hidden_layer + [output_size]
    params = []
    for i in range(len(dims) - 1):
        key, sub = jax.random.split(key)
        fan_in, fan_out = dims[i], dims[i + 1]
        std = (2.0 / fan_in) ** 0.5  # gain sqrt(2) / sqrt(fan_in)
        w = std * jax.random.normal(sub, (fan_in, fan_out), dtype=jnp.float32)
        b = jnp.zeros((fan_out,), dtype=jnp.float32)
        params.append((w, b))
    return params


def reference_forward(x, params, compute_dtype=jnp.bfloat16):
    """Pure-JAX reference mirroring the kernel's dtype handling."""
    h = x.astype(compute_dtype)
    for li, (w, b) in enumerate(params):
        acc = jnp.dot(h, w.astype(compute_dtype),
                      preferred_element_type=jnp.float32) + b.astype(jnp.float32)
        if li < len(params) - 1:
            acc = jnp.maximum(acc, 0.0)
            h = acc.astype(compute_dtype)
        else:
            h = acc
    return h


if __name__ == "__main__":
    # Small shapes consistent with the module's forward: x is (batch, input_size).
    batch = 2
    input_size = 32
    hidden_dim = 32
    output_size = 8
    num_hidden_layer = 4  # module default

    key = jax.random.PRNGKey(0)
    key, xkey = jax.random.split(key)
    x = jax.random.normal(xkey, (batch, input_size), dtype=jnp.float32)

    params = init_params(key, input_size, output_size, num_hidden_layer, hidden_dim)

    out = goal_conditioned_policy_net(x, params, compute_dtype=jnp.bfloat16)
    out = jax.block_until_ready(out)

    ref = reference_forward(x, params, compute_dtype=jnp.bfloat16)
    assert out.shape == (batch, output_size), out.shape
    assert jnp.allclose(out, ref, atol=1e-2, rtol=1e-2), "mismatch vs reference"

    print("KERNEL_OK")
</pallas_src>

<mosaic_0001>
module attributes {stable_mosaic.version = 11 : i64} {
  func.func @_mlp_kernel(%arg0: i32, %arg1: memref<8x128xbf16, #tpu.memory_space<vmem>>, %arg2: memref<5x128x128xbf16, #tpu.memory_space<vmem>>, %arg3: memref<5x1x128xf32, #tpu.memory_space<vmem>>, %arg4: memref<8x128xf32, #tpu.memory_space<vmem>>) attributes {dimension_semantics = [#tpu.dimension_semantics<parallel>], iteration_bounds = array<i64: 1>, scalar_prefetch = 0 : i64, scratch_operands = 0 : i64, tpu.core_type = #tpu.core_type<tc>, window_params = [{transform_indices = @transform_0, window_bounds = array<i64: 8, 128>}, {pipeline_mode = #tpu.pipeline_mode<synchronous>, transform_indices = @transform_1, window_bounds = array<i64: 5, 128, 128>}, {pipeline_mode = #tpu.pipeline_mode<synchronous>, transform_indices = @transform_2, window_bounds = array<i64: 5, 1, 128>}, {transform_indices = @transform_3, window_bounds = array<i64: 8, 128>}]} {
    %c0 = arith.constant 0 : index
    %c0_0 = arith.constant 0 : index
    %0 = vector.load %arg1[%c0, %c0_0] : memref<8x128xbf16, #tpu.memory_space<vmem>>, vector<8x128xbf16>
    %c0_1 = arith.constant 0 : index
    %c0_2 = arith.constant 0 : index
    %c0_3 = arith.constant 0 : index
    %1 = vector.load %arg2[%c0_1, %c0_2, %c0_3] : memref<5x128x128xbf16, #tpu.memory_space<vmem>>, vector<1x128x128xbf16>
    %2 = vector.shape_cast %1 : vector<1x128x128xbf16> to vector<128x128xbf16>
    %c0_4 = arith.constant 0 : index
    %c0_5 = arith.constant 0 : index
    %c0_6 = arith.constant 0 : index
    %3 = vector.load %arg3[%c0_4, %c0_5, %c0_6] : memref<5x1x128xf32, #tpu.memory_space<vmem>>, vector<1x1x128xf32>
    %4 = vector.shape_cast %3 : vector<1x1x128xf32> to vector<1x128xf32>
    %cst = arith.constant dense<0.000000e+00> : vector<8x128xf32>
    %5 = tpu.matmul %0, %2, %cst {dimension_numbers = #tpu.dot_dimension_numbers<[1], [0], [0], [1], [0, 0, 1, 1], [], []>} : vector<8x128xbf16>, vector<128x128xbf16>, vector<8x128xf32> -> vector<8x128xf32>
    %6 = vector.broadcast %4 : vector<1x128xf32> to vector<8x128xf32>
    %7 = arith.addf %5, %6 : vector<8x128xf32>
    %cst_7 = arith.constant 0.000000e+00 : f32
    %8 = vector.broadcast %cst_7 : f32 to vector<8x128xf32>
    %9 = arith.maximumf %7, %8 : vector<8x128xf32>
    %10 = arith.truncf %9 : vector<8x128xf32> to vector<8x128xbf16>
    %c1 = arith.constant 1 : index
    %c0_8 = arith.constant 0 : index
    %c0_9 = arith.constant 0 : index
    %11 = vector.load %arg2[%c1, %c0_8, %c0_9] : memref<5x128x128xbf16, #tpu.memory_space<vmem>>, vector<1x128x128xbf16>
    %12 = vector.shape_cast %11 : vector<1x128x128xbf16> to vector<128x128xbf16>
    %c1_10 = arith.constant 1 : index
    %c0_11 = arith.constant 0 : index
    %c0_12 = arith.constant 0 : index
    %13 = vector.load %arg3[%c1_10, %c0_11, %c0_12] : memref<5x1x128xf32, #tpu.memory_space<vmem>>, vector<1x1x128xf32>
    %14 = vector.shape_cast %13 : vector<1x1x128xf32> to vector<1x128xf32>
    %cst_13 = arith.constant dense<0.000000e+00> : vector<8x128xf32>
    %15 = tpu.matmul %10, %12, %cst_13 {dimension_numbers = #tpu.dot_dimension_numbers<[1], [0], [0], [1], [0, 0, 1, 1], [], []>} : vector<8x128xbf16>, vector<128x128xbf16>, vector<8x128xf32> -> vector<8x128xf32>
    %16 = vector.broadcast %14 : vector<1x128xf32> to vector<8x128xf32>
    %17 = arith.addf %15, %16 : vector<8x128xf32>
    %cst_14 = arith.constant 0.000000e+00 : f32
    %18 = vector.broadcast %cst_14 : f32 to vector<8x128xf32>
    %19 = arith.maximumf %17, %18 : vector<8x128xf32>
    %20 = arith.truncf %19 : vector<8x128xf32> to vector<8x128xbf16>
    %c2 = arith.constant 2 : index
    %c0_15 = arith.constant 0 : index
    %c0_16 = arith.constant 0 : index
    %21 = vector.load %arg2[%c2, %c0_15, %c0_16] : memref<5x128x128xbf16, #tpu.memory_space<vmem>>, vector<1x128x128xbf16>
    %22 = vector.shape_cast %21 : vector<1x128x128xbf16> to vector<128x128xbf16>
    %c2_17 = arith.constant 2 : index
    %c0_18 = arith.constant 0 : index
    %c0_19 = arith.constant 0 : index
    %23 = vector.load %arg3[%c2_17, %c0_18, %c0_19] : memref<5x1x128xf32, #tpu.memory_space<vmem>>, vector<1x1x128xf32>
    %24 = vector.shape_cast %23 : vector<1x1x128xf32> to vector<1x128xf32>
    %cst_20 = arith.constant dense<0.000000e+00> : vector<8x128xf32>
    %25 = tpu.matmul %20, %22, %cst_20 {dimension_numbers = #tpu.dot_dimension_numbers<[1], [0], [0], [1], [0, 0, 1, 1], [], []>} : vector<8x128xbf16>, vector<128x128xbf16>, vector<8x128xf32> -> vector<8x128xf32>
    %26 = vector.broadcast %24 : vector<1x128xf32> to vector<8x128xf32>
    %27 = arith.addf %25, %26 : vector<8x128xf32>
    %cst_21 = arith.constant 0.000000e+00 : f32
    %28 = vector.broadcast %cst_21 : f32 to vector<8x128xf32>
    %29 = arith.maximumf %27, %28 : vector<8x128xf32>
    %30 = arith.truncf %29 : vector<8x128xf32> to vector<8x128xbf16>
    %c3 = arith.constant 3 : index
    %c0_22 = arith.constant 0 : index
    %c0_23 = arith.constant 0 : index
    %31 = vector.load %arg2[%c3, %c0_22, %c0_23] : memref<5x128x128xbf16, #tpu.memory_space<vmem>>, vector<1x128x128xbf16>
    %32 = vector.shape_cast %31 : vector<1x128x128xbf16> to vector<128x128xbf16>
    %c3_24 = arith.constant 3 : index
    %c0_25 = arith.constant 0 : index
    %c0_26 = arith.constant 0 : index
    %33 = vector.load %arg3[%c3_24, %c0_25, %c0_26] : memref<5x1x128xf32, #tpu.memory_space<vmem>>, vector<1x1x128xf32>
    %34 = vector.shape_cast %33 : vector<1x1x128xf32> to vector<1x128xf32>
    %cst_27 = arith.constant dense<0.000000e+00> : vector<8x128xf32>
    %35 = tpu.matmul %30, %32, %cst_27 {dimension_numbers = #tpu.dot_dimension_numbers<[1], [0], [0], [1], [0, 0, 1, 1], [], []>} : vector<8x128xbf16>, vector<128x128xbf16>, vector<8x128xf32> -> vector<8x128xf32>
    %36 = vector.broadcast %34 : vector<1x128xf32> to vector<8x128xf32>
    %37 = arith.addf %35, %36 : vector<8x128xf32>
    %cst_28 = arith.constant 0.000000e+00 : f32
    %38 = vector.broadcast %cst_28 : f32 to vector<8x128xf32>
    %39 = arith.maximumf %37, %38 : vector<8x128xf32>
    %40 = arith.truncf %39 : vector<8x128xf32> to vector<8x128xbf16>
    %c4 = arith.constant 4 : index
    %c0_29 = arith.constant 0 : index
    %c0_30 = arith.constant 0 : index
    %41 = vector.load %arg2[%c4, %c0_29, %c0_30] : memref<5x128x128xbf16, #tpu.memory_space<vmem>>, vector<1x128x128xbf16>
    %42 = vector.shape_cast %41 : vector<1x128x128xbf16> to vector<128x128xbf16>
    %c4_31 = arith.constant 4 : index
    %c0_32 = arith.constant 0 : index
    %c0_33 = arith.constant 0 : index
    %43 = vector.load %arg3[%c4_31, %c0_32, %c0_33] : memref<5x1x128xf32, #tpu.memory_space<vmem>>, vector<1x1x128xf32>
    %44 = vector.shape_cast %43 : vector<1x1x128xf32> to vector<1x128xf32>
    %cst_34 = arith.constant dense<0.000000e+00> : vector<8x128xf32>
    %45 = tpu.matmul %40, %42, %cst_34 {dimension_numbers = #tpu.dot_dimension_numbers<[1], [0], [0], [1], [0, 0, 1, 1], [], []>} : vector<8x128xbf16>, vector<128x128xbf16>, vector<8x128xf32> -> vector<8x128xf32>
    %46 = vector.broadcast %44 : vector<1x128xf32> to vector<8x128xf32>
    %47 = arith.addf %45, %46 : vector<8x128xf32>
    %c0_35 = arith.constant 0 : index
    %c0_36 = arith.constant 0 : index
    %48 = vector.load %arg4[%c0_35, %c0_36] : memref<8x128xf32, #tpu.memory_space<vmem>>, vector<8x128xf32>
    tpu.vector_store %arg4[%c0_35, %c0_36], %47 {strides = array<i32>} : memref<8x128xf32, #tpu.memory_space<vmem>>, vector<8x128xf32>,
    return
  }
  func.func @transform_0(%arg0: i32) -> (i32, i32) {
    %c0_i32 = arith.constant 0 : i32
    %c0_i32_0 = arith.constant 0 : i32
    return %arg0, %c0_i32 : i32, i32
  }
  func.func @transform_1(%arg0: i32) -> (i32, i32, i32) {
    %c0_i32 = arith.constant 0 : i32
    %c0_i32_0 = arith.constant 0 : i32
    %c0_i32_1 = arith.constant 0 : i32
    %c0_i32_2 = arith.constant 0 : i32
    return %c0_i32, %c0_i32_0, %c0_i32_1 : i32, i32, i32
  }
  func.func @transform_2(%arg0: i32) -> (i32, i32, i32) {
    %c0_i32 = arith.constant 0 : i32
    %c0_i32_0 = arith.constant 0 : i32
    %c0_i32_1 = arith.constant 0 : i32
    %c0_i32_2 = arith.constant 0 : i32
    return %c0_i32, %c0_i32_0, %c0_i32_1 : i32, i32, i32
  }
  func.func @transform_3(%arg0: i32) -> (i32, i32) {
    %c0_i32 = arith.constant 0 : i32
    %c0_i32_0 = arith.constant 0 : i32
    return %arg0, %c0_i32 : i32, i32
  }
}

</mosaic_0001>

<bundles_post_ra>
// kernel: tpu_custom_call.1
= control target key start
LH: loop header
LB: loop body
LE: loop exit
PB: predicated region body
PF: predicated region fallthrough
CT: control target
= control target key end

     0   :  { %8 = vsyncpa [#allocation3], 0  ;;  %s1062_s0 = inlined_call_operand.hbm [shape: bf16[8,128], index: 0, kind: input, shape index: {}]   ;;  %s1063_s1 = inlined_call_operand.hbm [shape: bf16[5,128,128], index: 1, kind: input, shape index: {}]   ;;  %s1064_s2 = inlined_call_operand.hbm [shape: f32[5,1,128], index: 2, kind: input, shape index: {}]   ;;  %s1065_s3 = inlined_call_operand.hbm [shape: f32[8,128], index: 3, kind: output, shape index: {}]  }
   0x1   :  { %9 = vsyncpa [#allocation6], 0 }
   0x2   :  { %10 = vsyncpa [#allocation4], 0  ;;  %s970_s12 = smov [#allocation5]  }
   0x3   :  { %s26_s13 = sshll.u32 %s970_s12, 4  ;;  %s27_s13 = int_to_ptr.vmem [resolvable:$true] %s26_s13 }
   0x4   :  { %s892_s14 = scalar_lea.vmem %s27_s13, 5120  ;;  %p897_p1 = scmp.lt.s32.totalorder %s27_s13, %s27_s13 }
   0x5   :  { %p893_p0 = scmp.ne.s32.totalorder %s27_s13, %s892_s14  ;;  %p898_p2 = scmp.lt.s32.totalorder %s892_s14, %s892_s14 }
   0x7   :  { %p899_p3 = por %p898_p2, %p897_p1 }
   0x9   :  { %p900_p4 = pnand %p899_p3, %p893_p0 }
   0xb   :  { %903 = shalt.err (!%p900_p4)
}
   0xc   :  { %s971_s15 = smov 64   ;;  %s972_s16 = smov 4  }
   0xd   :  { %32 = dma.hbm_to_vmem [thread:$0]  %s1063_s1, 5120, %s27_s13, [#allocation6], %s971_s15, %s971_s15, %s972_s16  }
   0xe   :  { %s973_s19 = smov [#allocation2]   ;;  %s974_s21 = smov [#allocation7]  }
   0xf   :  { %s17_s20 = sshll.u32 %s973_s19, 4  ;;  %s38_s22 = sshll.u32 %s974_s21, 4  ;;  %s18_s20 = int_to_ptr.vmem [resolvable:$true] %s17_s20  ;;  %s39_s22 = int_to_ptr.vmem [resolvable:$true] %s38_s22 }
  0x10   :  { %s912_s23 = scalar_lea.vmem %s18_s20, 64  ;;  %p917_p6 = scmp.lt.s32.totalorder %s18_s20, %s18_s20 }
  0x11   :  { %p913_p5 = scmp.ne.s32.totalorder %s18_s20, %s912_s23  ;;  %p918_p7 = scmp.lt.s32.totalorder %s912_s23, %s912_s23 }
  0x13   :  { %p919_p8 = por %p918_p7, %p917_p6 }
  0x15   :  { %p920_p9 = pnand %p919_p8, %p913_p5 }
  0x17   :  { %923 = shalt.err (!%p920_p9)
}
  0x18   :  { %20 = dma.hbm_to_vmem [thread:$0]  %s1062_s0, 64, %s18_s20, [#allocation3]  }
  0x19   :  { %s932_s26 = scalar_lea.vmem %s39_s22, 80  ;;  %s936_s1 = scalar_lea.vmem %s39_s22, 96 }
  0x1a   :  { %p933_p10 = scmp.ne.s32.totalorder %s39_s22, %s932_s26  ;;  %p937_p11 = scmp.lt.s32.totalorder %s39_s22, %s39_s22 }
  0x1b   :  { %p938_p12 = scmp.lt.s32.totalorder %s936_s1, %s932_s26 }
  0x1d   :  { %p939_p13 = por %p938_p12, %p937_p11 }
  0x1f   :  { %p940_p0 = pnand %p939_p13, %p933_p10 }
  0x21   :  { %943 = shalt.err (!%p940_p0)
}
  0x22   :  { %s975_s27 = smov 16   ;;  %s976_s28 = smov 1  }
  0x23   :  { %44 = dma.hbm_to_vmem [thread:$0]  %s1064_s2, 80, %s39_s22, [#allocation6], %s975_s27, %s975_s27, %s976_s28  }
  0x24   :  { %964 = dma.done.wait [#allocation3], 64  }
  0x25   :  { %965 = vsyncadd [#allocation3], 4294967232 }
  0x26   :  { %966 = dma.done.wait [#allocation6], 5200  }
  0x27   :  { %967 = vsyncadd [#allocation6], 4294962096  ;;  %v977_v0 = vmov 0.0   ;;  %vm978_vm0 = vmmov 0   ;;  %v844_v1 = vld [vmem:[#allocation5 + $0x38] sm:$0xff]   ;;  %v845_v2 = vld [vmem:[#allocation5 + $0x30] sm:$0xff]  }
  0x28   :  { %734 = vmatprep.subr.bf16.mxu0 %v977_v0  ;;  %750 = vmatprep.mubr.msk.bf16.mxu0 %vm978_vm0, %v977_v0  ;;  %v846_v3 = vld [vmem:[#allocation5 + $0x28] sm:$0xff]   ;;  %v852_v4 = vld [vmem:[#allocation5 + $0x78] sm:$0xff]   ;;  %v847_v5 = vld [vmem:[#allocation5 + $0x20] sm:$0xff]   ;;  %s979_s0 = smov [#allocation8]  }
  0x29   :  { %754 = vmatprep.subr.bf16.mxu1 %v977_v0  ;;  %770 = vmatprep.mubr.msk.bf16.mxu1 %vm978_vm0, %v977_v0  ;;  %v853_v6 = vld [vmem:[#allocation5 + $0x70] sm:$0xff]   ;;  %v848_v7 = vld [vmem:[#allocation5 + $0x18] sm:$0xff]   ;;  %v854_v8 = vld [vmem:[#allocation5 + $0x68] sm:$0xff]   ;;  %s634_s2 = sshll.u32 %s979_s0, 4  ;;  %s635_s2 = int_to_ptr.vmem [resolvable:$true] %s634_s2 }
  0x2a   :  { %735 = vmatpush3.bf16.msra.mxu0 %v844_v1  ;;  %755 = vmatpush3.bf16.msra.mxu1 %v852_v4  ;;  %v849_v9 = vld [vmem:[#allocation5 + $0x10] sm:$0xff]   ;;  %v855_v10 = vld [vmem:[#allocation5 + $0x60] sm:$0xff]   ;;  %v850_v11 = vld [vmem:[#allocation5 + $0x8] sm:$0xff]   ;;  %s944_s4 = scalar_lea.vmem %s635_s2, 128  ;;  %p949_p2 = scmp.lt.s32.totalorder %s635_s2, %s635_s2 }
  0x2b   :  { %736 = vmatprep.subr.bf16.mxu0 %v977_v0  ;;  %756 = vmatprep.subr.bf16.mxu1 %v977_v0  ;;  %v856_v12 = vld [vmem:[#allocation5 + $0x58] sm:$0xff]   ;;  %v851_v13 = vld [vmem:[#allocation5] sm:$0xff]   ;;  %v857_v14 = vld [vmem:[#allocation5 + $0x50] sm:$0xff]   ;;  %p945_p1 = scmp.ne.s32.totalorder %s635_s2, %s944_s4  ;;  %p950_p3 = scmp.lt.s32.totalorder %s944_s4, %s944_s4 }
  0x2c   :  { %v55_v15 = vld [vmem:[#allocation2] sm:$0xf]  ;;  %v858_v16 = vld [vmem:[#allocation5 + $0x48] sm:$0xff]   ;;  %v859_v17 = vld [vmem:[#allocation5 + $0x40] sm:$0xff]  }
  0x2d   :  { %v860_v18 = vld [vmem:[#allocation5 + $0xb8] sm:$0xff]   ;;  %v861_v19 = vld [vmem:[#allocation5 + $0xb0] sm:$0xff]   ;;  %v862_v20 = vld [vmem:[#allocation5 + $0xa8] sm:$0xff]   ;;  %p951_p4 = por %p950_p3, %p949_p2 }
  0x2e   :  { %737 = vmatpush3.bf16.msra.mxu0 %v845_v2  ;;  %757 = vmatpush3.bf16.msra.mxu1 %v853_v6  ;;  %v863_v21 = vld [vmem:[#allocation5 + $0xa0] sm:$0xff]   ;;  %v864_v22 = vld [vmem:[#allocation5 + $0x98] sm:$0xff]   ;;  %v865_v23 = vld [vmem:[#allocation5 + $0x90] sm:$0xff]  }
  0x2f   :  { %738 = vmatprep.subr.bf16.mxu0 %v977_v0  ;;  %758 = vmatprep.subr.bf16.mxu1 %v977_v0  ;;  %v644_v24 = vld [vmem:[#allocation7] ss:$0 sm:$0xff]  ;;  %v866_v32 = vld [vmem:[#allocation5 + $0x88] sm:$0xff]   ;;  %v868_v34 = vld [vmem:[#allocation5 + $0xf8] sm:$0xff]   ;;  %p952_p5 = pnand %p951_p4, %p945_p1 }
  0x30   :  { %v867_v33 = vld [vmem:[#allocation5 + $0x80] sm:$0xff]   ;;  %v869_v35 = vld [vmem:[#allocation5 + $0xf0] sm:$0xff]   ;;  %v870_v36 = vld [vmem:[#allocation5 + $0xe8] sm:$0xff]  }
  0x31   :  { %v871_v37 = vld [vmem:[#allocation5 + $0xe0] sm:$0xff]   ;;  %v872_v38 = vld [vmem:[#allocation5 + $0xd8] sm:$0xff]   ;;  %v873_v39 = vld [vmem:[#allocation5 + $0xd0] sm:$0xff]  }
  0x32   :  { %739 = vmatpush3.bf16.msra.mxu0 %v846_v3  ;;  %759 = vmatpush3.bf16.msra.mxu1 %v854_v8  ;;  %v653_v40 = vld [vmem:[#allocation7 + $0x1] ss:$0 sm:$0xff]  ;;  %v874_v48 = vld [vmem:[#allocation5 + $0xc8] sm:$0xff]   ;;  %v876_v50 = vld [vmem:[#allocation5 + $0x138] sm:$0xff]  }
  0x33   :  { %740 = vmatprep.subr.bf16.mxu0 %v977_v0  ;;  %760 = vmatprep.subr.bf16.mxu1 %v977_v0  ;;  %v875_v49 = vld [vmem:[#allocation5 + $0xc0] sm:$0xff]   ;;  %v877_v51 = vld [vmem:[#allocation5 + $0x130] sm:$0xff]   ;;  %v878_v52 = vld [vmem:[#allocation5 + $0x128] sm:$0xff]  }
  0x34   :  { %v879_v53 = vld [vmem:[#allocation5 + $0x120] sm:$0xff]   ;;  %v880_v54 = vld [vmem:[#allocation5 + $0x118] sm:$0xff]   ;;  %v881_v55 = vld [vmem:[#allocation5 + $0x110] sm:$0xff]  }
  0x35   :  { %v662_v56 = vld [vmem:[#allocation7 + $0x2] ss:$0 sm:$0xff]  ;;  %v882_v1 = vld [vmem:[#allocation5 + $0x108] sm:$0xff]   ;;  %v671_v3 = vld [vmem:[#allocation7 + $0x3] ss:$0 sm:$0xff] }
  0x36   :  { %741 = vmatpush3.bf16.msra.mxu0 %v847_v5  ;;  %761 = vmatpush3.bf16.msra.mxu1 %v855_v10  ;;  %v883_v2 = vld [vmem:[#allocation5 + $0x100] sm:$0xff]  }
  0x37   :  { %742 = vmatprep.subr.bf16.mxu0 %v977_v0  ;;  %762 = vmatprep.subr.bf16.mxu1 %v977_v0 }
  0x3a   :  { %743 = vmatpush3.bf16.msra.mxu0 %v848_v7  ;;  %763 = vmatpush3.bf16.msra.mxu1 %v856_v12 }
  0x3b   :  { %744 = vmatprep.subr.bf16.mxu0 %v977_v0  ;;  %764 = vmatprep.subr.bf16.mxu1 %v977_v0 }
  0x3e   :  { %745 = vmatpush3.bf16.msra.mxu0 %v849_v9  ;;  %765 = vmatpush3.bf16.msra.mxu1 %v857_v14 }
  0x3f   :  { %746 = vmatprep.subr.bf16.mxu0 %v977_v0  ;;  %766 = vmatprep.subr.bf16.mxu1 %v977_v0 }
  0x42   :  { %747 = vmatpush3.bf16.msra.mxu0 %v850_v11  ;;  %767 = vmatpush3.bf16.msra.mxu1 %v858_v16  ;;  %v680_v11 = vld [vmem:[#allocation7 + $0x4] ss:$0 sm:$0xff] }
  0x43   :  { %748 = vmatprep.subr.bf16.mxu0 %v977_v0  ;;  %768 = vmatprep.subr.bf16.mxu1 %v977_v0 }
  0x46   :  { %749 = vmatpush3.bf16.msra.mxu0 %v851_v13  ;;  %769 = vmatpush3.bf16.msra.mxu1 %v859_v17 }
  0x47   :  { %774 = vmatprep.subr.bf16.mxu0 %v977_v0  ;;  %794 = vmatprep.subr.bf16.mxu1 %v977_v0 }
  0x49   :  { %751 = vmatmul.mubr.bf16.vlgmr.msra.gmra.mxu0 %v55_v15 }
  0x4a   :  { %790 = vmatprep.mubr.msk.bf16.mxu0 %vm978_vm0, %v977_v0  ;;  %775 = vmatpush3.bf16.msra.mxu0 %v860_v18 }
  0x4b   :  { %776 = vmatprep.subr.bf16.mxu0 %v977_v0 }
  0x4e   :  { %777 = vmatpush3.bf16.msra.mxu0 %v861_v19 }
  0x4f   :  { %778 = vmatprep.subr.bf16.mxu0 %v977_v0 }
  0x52   :  { %779 = vmatpush3.bf16.msra.mxu0 %v862_v20 }
  0x53   :  { %780 = vmatprep.subr.bf16.mxu0 %v977_v0 }
  0x56   :  { %781 = vmatpush3.bf16.msra.mxu0 %v863_v21 }
  0x57   :  { %782 = vmatprep.subr.bf16.mxu0 %v977_v0 }
  0x5a   :  { %783 = vmatpush3.bf16.msra.mxu0 %v864_v22 }
  0x5b   :  { %784 = vmatprep.subr.bf16.mxu0 %v977_v0 }
  0x5e   :  { %785 = vmatpush3.bf16.msra.mxu0 %v865_v23 }
  0x5f   :  { %786 = vmatprep.subr.bf16.mxu0 %v977_v0 }
  0x62   :  { %787 = vmatpush3.bf16.msra.mxu0 %v866_v32 }
  0x63   :  { %788 = vmatprep.subr.bf16.mxu0 %v977_v0 }
  0x66   :  { %789 = vmatpush3.bf16.msra.mxu0 %v867_v33 }
  0x67   :  { %814 = vmatprep.subr.bf16.mxu0 %v977_v0 }
 0x109   :  { %v161_v25 = vpop.f32.mrf.mxu0 }
 0x10a   :  { %v162_v26 = vadd.f32 %v644_v24, %v161_v25 }
 0x10b   :  { %v752_v27 = vpop.f32.mrf.mxu0 }
 0x10c   :  { %v167_v28 = vmax.f32 %v162_v26, 0.0 }
 0x10d   :  { %v164_v29 = vpop.f32.mrf.mxu0 }
 0x10e   :  { %v168_v30 = vpack.c.bf16 %v167_v28, %v167_v28 }
 0x10f   :  { %v753_v31 = vpop.f32.mrf.mxu0 }
 0x110   :  { %771 = vmatmul.mubr.bf16.vlgmr.msra.gmra.mxu1 %v168_v30 }
 0x111   :  { %810 = vmatprep.mubr.msk.bf16.mxu1 %vm978_vm0, %v977_v0  ;;  %795 = vmatpush3.bf16.msra.mxu1 %v868_v34 }
 0x112   :  { %796 = vmatprep.subr.bf16.mxu1 %v977_v0 }
 0x115   :  { %797 = vmatpush3.bf16.msra.mxu1 %v869_v35 }
 0x116   :  { %798 = vmatprep.subr.bf16.mxu1 %v977_v0 }
 0x119   :  { %799 = vmatpush3.bf16.msra.mxu1 %v870_v36 }
 0x11a   :  { %800 = vmatprep.subr.bf16.mxu1 %v977_v0 }
 0x11d   :  { %801 = vmatpush3.bf16.msra.mxu1 %v871_v37 }
 0x11e   :  { %802 = vmatprep.subr.bf16.mxu1 %v977_v0 }
 0x121   :  { %803 = vmatpush3.bf16.msra.mxu1 %v872_v38 }
 0x122   :  { %804 = vmatprep.subr.bf16.mxu1 %v977_v0 }
 0x125   :  { %805 = vmatpush3.bf16.msra.mxu1 %v873_v39 }
 0x126   :  { %806 = vmatprep.subr.bf16.mxu1 %v977_v0 }
 0x129   :  { %807 = vmatpush3.bf16.msra.mxu1 %v874_v48 }
 0x12a   :  { %808 = vmatprep.subr.bf16.mxu1 %v977_v0 }
 0x12d   :  { %809 = vmatpush3.bf16.msra.mxu1 %v875_v49 }
 0x1d0   :  { %v276_v41 = vpop.f32.mrf.mxu1 }
 0x1d1   :  { %v277_v42 = vadd.f32 %v653_v40, %v276_v41 }
 0x1d2   :  { %v772_v43 = vpop.f32.mrf.mxu1 }
 0x1d3   :  { %v282_v44 = vmax.f32 %v277_v42, 0.0 }
 0x1d4   :  { %v279_v45 = vpop.f32.mrf.mxu1 }
 0x1d5   :  { %v283_v46 = vpack.c.bf16 %v282_v44, %v282_v44 }
 0x1d6   :  { %v773_v47 = vpop.f32.mrf.mxu1 }
 0x1d7   :  { %791 = vmatmul.mubr.bf16.vlgmr.msra.gmra.mxu0 %v283_v46 }
 0x1d8   :  { %830 = vmatprep.mubr.msk.bf16.mxu0 %vm978_vm0, %v977_v0  ;;  %815 = vmatpush3.bf16.msra.mxu0 %v876_v50 }
 0x1d9   :  { %816 = vmatprep.subr.bf16.mxu0 %v977_v0 }
 0x1dc   :  { %817 = vmatpush3.bf16.msra.mxu0 %v877_v51 }
 0x1dd   :  { %818 = vmatprep.subr.bf16.mxu0 %v977_v0 }
 0x1e0   :  { %819 = vmatpush3.bf16.msra.mxu0 %v878_v52 }
 0x1e1   :  { %820 = vmatprep.subr.bf16.mxu0 %v977_v0 }
 0x1e4   :  { %821 = vmatpush3.bf16.msra.mxu0 %v879_v53 }
 0x1e5   :  { %822 = vmatprep.subr.bf16.mxu0 %v977_v0 }
 0x1e8   :  { %823 = vmatpush3.bf16.msra.mxu0 %v880_v54 }
 0x1e9   :  { %824 = vmatprep.subr.bf16.mxu0 %v977_v0 }
 0x1ec   :  { %825 = vmatpush3.bf16.msra.mxu0 %v881_v55 }
 0x1ed   :  { %826 = vmatprep.subr.bf16.mxu0 %v977_v0 }
 0x1f0   :  { %827 = vmatpush3.bf16.msra.mxu0 %v882_v1 }
 0x1f1   :  { %828 = vmatprep.subr.bf16.mxu0 %v977_v0 }
 0x1f4   :  { %829 = vmatpush3.bf16.msra.mxu0 %v883_v2 }
 0x297   :  { %v391_v57 = vpop.f32.mrf.mxu0 }
 0x298   :  { %v392_v58 = vadd.f32 %v662_v56, %v391_v57 }
 0x299   :  { %v792_v59 = vpop.f32.mrf.mxu0 }
 0x29a   :  { %v397_v60 = vmax.f32 %v392_v58, 0.0 }
 0x29b   :  { %v394_v61 = vpop.f32.mrf.mxu0 }
 0x29c   :  { %v398_v62 = vpack.c.bf16 %v397_v60, %v397_v60 }
 0x29d   :  { %v793_v63 = vpop.f32.mrf.mxu0 }
 0x29e   :  { %811 = vmatmul.mubr.bf16.vlgmr.msra.gmra.mxu1 %v398_v62 }
 0x35e   :  { %v506_v4 = vpop.f32.mrf.mxu1 }
 0x35f   :  { %v507_v5 = vadd.f32 %v671_v3, %v506_v4 }
 0x360   :  { %v812_v6 = vpop.f32.mrf.mxu1 }
 0x361   :  { %v512_v7 = vmax.f32 %v507_v5, 0.0 }
 0x362   :  { %v509_v8 = vpop.f32.mrf.mxu1 }
 0x363   :  { %v513_v9 = vpack.c.bf16 %v512_v7, %v512_v7 }
 0x364   :  { %v813_v10 = vpop.f32.mrf.mxu1 }
 0x365   :  { %831 = vmatmul.mubr.bf16.vlgmr.msra.gmra.mxu0 %v513_v9 }
 0x425   :  { %v621_v12 = vpop.f32.mrf.mxu0 }
 0x426   :  { %v622_v13 = vadd.f32 %v680_v11, %v621_v12 }
 0x427   :  { %v832_v14 = vpop.f32.mrf.mxu0 }
 0x428   :  { %627 = vst [vmem:[#allocation8] sm:$0xff] %v622_v13 }
 0x429   :  { %v624_v0 = vpop.f32.mrf.mxu0 }
 0x42a   :  { %955 = shalt.err (!%p952_p5)
}
 0x42b   :  { %637 = dma.vmem_to_hbm [thread:$0]  %s635_s2, 128, %s1065_s3, [#allocation4]   ;;  %v833_v15 = vpop.f32.mrf.mxu0 }
 0x42c   :  { %968 = dma.done.wait [#allocation4], 128  }
 0x42d   :  { %969 = vsyncadd [#allocation4], 4294967168 }
 0x42e   :  { %641 = vsyncpa [#allocation3], 1 }
 0x42f   :  { %642 = vsyncpa [#allocation6], 1 }
 0x430   :  { %643 = vsyncpa [#allocation4], 1 }

</bundles_post_ra>
